<compile_context>
chip_gen: v7x
topology: tpu7x:2x2x1
jax: 0.10.0
libtpu: 0.0.40
codegen_flags: <defaults>
</compile_context>

<pallas_src>
import jax
import jax.numpy as jnp
from jax.experimental import pallas as pl
from jax.experimental.pallas import tpu as pltpu

KH = KW = 3  # 3x3 conv


def conv_bn_relu_kernel(x_ref, w_ref, shift_ref, o_ref):
    # x_ref:     (Kp, N*HW)   bf16 im2col columns (zero-padded contraction dim)
    # w_ref:     (Cout, Kp)   bf16 conv weights with BN-eval scale folded in (zero-padded)
    # shift_ref: (Cout, 1)    f32  beta + (conv_bias - running_mean) * scale
    # o_ref:     (Cout, N*HW) f32  lane-dense output slab
    y = jnp.dot(w_ref[...], x_ref[...], preferred_element_type=jnp.float32)  # one MXU GEMM
    o_ref[...] = jnp.maximum(y + shift_ref[...], 0.0).astype(o_ref.dtype)


def teacher_conv_bn_act(x_nchw, w_oihw, bias, gamma, beta,
                        running_mean, running_var, eps=1e-5):
    """Forward pass of TeacherConvBnAct (eval mode). Input/output are NCHW float32."""
    N, Cin, H, W = x_nchw.shape
    Cout = w_oihw.shape[0]
    HW = H * W
    NHW = N * HW
    K = KH * KW * Cin
    Kp = ((K + 7) // 8) * 8  # 36 -> 40: keep the sublane (contraction) axis unmasked

    # --- wrapper glue (XLA-fused, not the hot path) ------------------------------
    x = x_nchw.astype(jnp.float32)
    xp = jnp.pad(x, ((0, 0), (0, 0), (1, 1), (1, 1)))  # (N, Cin, H+2, W+2)

    # im2col -> (K, N*HW); rows ordered k = (kh*3 + kw)*Cin + ci, columns (n, h*W + w).
    patches = [
        jnp.transpose(
            xp[:, :, kh:kh + H, kw:kw + W].reshape(N, Cin, HW), (1, 0, 2)
        ).reshape(Cin, NHW)
        for kh in range(KH) for kw in range(KW)
    ]
    x_cols = jnp.concatenate(patches, axis=0)                       # (K, N*HW)
    x_cols = jnp.pad(x_cols, ((0, Kp - K), (0, 0))).astype(jnp.bfloat16)

    # BN-eval affine folded: scale goes into the weights, shift stays in the kernel (f32).
    scale = (gamma / jnp.sqrt(running_var + eps)).astype(jnp.float32)
    w_mat = jnp.transpose(w_oihw, (0, 2, 3, 1)).reshape(Cout, K).astype(jnp.float32)
    w_mat = w_mat * scale[:, None]                                  # (Cout, K)
    w_mat = jnp.pad(w_mat, ((0, 0), (0, Kp - K))).astype(jnp.bfloat16)
    shift = (beta + (bias - running_mean) * scale).astype(jnp.float32).reshape(Cout, 1)

    cost = pl.CostEstimate(
        flops=2 * Cout * Kp * NHW,
        transcendentals=0,
        bytes_accessed=(x_cols.size * 2 + w_mat.size * 2
                        + shift.size * 4 + Cout * NHW * 4),
    )

    out_flat = pl.pallas_call(
        conv_bn_relu_kernel,
        out_shape=jax.ShapeDtypeStruct((Cout, NHW), jnp.float32),
        grid_spec=pltpu.PrefetchScalarGridSpec(
            num_scalar_prefetch=0,
            grid=(1,),
            in_specs=[
                pl.BlockSpec((Kp, NHW), lambda i: (0, 0)),
                pl.BlockSpec((Cout, Kp), lambda i: (0, 0)),
                pl.BlockSpec((Cout, 1), lambda i: (0, 0)),
            ],
            out_specs=pl.BlockSpec((Cout, NHW), lambda i: (0, 0)),
        ),
        compiler_params=pltpu.CompilerParams(
            dimension_semantics=("arbitrary",)),
        cost_estimate=cost,
    )(x_cols, w_mat, shift)

    # (Cout, N, H, W) -> (N, Cout, H, W): tiny (16 KB) transpose, fused by XLA.
    return jnp.transpose(out_flat.reshape(Cout, N, H, W), (1, 0, 2, 3))


def _reference(x_nchw, w_oihw, bias, gamma, beta, running_mean, running_var, eps=1e-5):
    """Pure-JAX reference (eval-mode semantics) for correctness checking."""
    y = jax.lax.conv_general_dilated(
        x_nchw.astype(jnp.float32), w_oihw.astype(jnp.float32),
        window_strides=(1, 1), padding=((1, 1), (1, 1)),
        dimension_numbers=("NCHW", "OIHW", "NCHW"))
    y = y + bias[None, :, None, None]
    y = (y - running_mean[None, :, None, None]) / jnp.sqrt(
        running_var + eps)[None, :, None, None]
    y = y * gamma[None, :, None, None] + beta[None, :, None, None]
    return jnp.maximum(y, 0.0)


if __name__ == "__main__":
    # Small deterministic setup: input_dim=4, output_dim=8, x: (2, 4, 16, 16)
    N, Cin, H, W = 2, 4, 16, 16
    Cout = 8

    key = jax.random.PRNGKey(0)
    kx, kw, kb, kg, kbeta, km, kv = jax.random.split(key, 7)

    x = jax.random.normal(kx, (N, Cin, H, W), dtype=jnp.float32)

    # Deterministic parameter init (shapes match nn.Conv2d(4, 8, 3) / nn.BatchNorm2d(8)).
    bound = 1.0 / jnp.sqrt(jnp.float32(Cin * KH * KW))
    w_oihw = jax.random.uniform(kw, (Cout, Cin, KH, KW),
                                minval=-bound, maxval=bound, dtype=jnp.float32)
    bias = jax.random.uniform(kb, (Cout,), minval=-bound, maxval=bound,
                              dtype=jnp.float32)
    gamma = jax.random.uniform(kg, (Cout,), minval=0.5, maxval=1.5,
                               dtype=jnp.float32)
    beta = jax.random.normal(kbeta, (Cout,), dtype=jnp.float32) * 0.1
    running_mean = jax.random.normal(km, (Cout,), dtype=jnp.float32) * 0.1
    running_var = jax.random.uniform(kv, (Cout,), minval=0.5, maxval=1.5,
                                     dtype=jnp.float32)

    out = teacher_conv_bn_act(x, w_oihw, bias, gamma, beta,
                              running_mean, running_var)
    out = jax.block_until_ready(out)

    ref = _reference(x, w_oihw, bias, gamma, beta, running_mean, running_var)
    ref = jax.block_until_ready(ref)

    assert out.shape == (N, Cout, H, W)
    # Tolerance loosened for bf16 MXU operands (f32 accumulation / epilogue).
    assert jnp.allclose(out, ref, atol=5e-2, rtol=5e-2), "mismatch vs reference"

    print("KERNEL_OK")
</pallas_src>

<mosaic_0001>
module attributes {stable_mosaic.version = 11 : i64} {
  func.func @conv_bn_relu_kernel(%arg0: i32, %arg1: memref<40x512xbf16, #tpu.memory_space<vmem>>, %arg2: memref<8x40xbf16, #tpu.memory_space<vmem>>, %arg3: memref<8x1xf32, #tpu.memory_space<vmem>>, %arg4: memref<8x512xf32, #tpu.memory_space<vmem>>) attributes {dimension_semantics = [#tpu.dimension_semantics<arbitrary>], iteration_bounds = array<i64: 1>, scalar_prefetch = 0 : i64, scratch_operands = 0 : i64, tpu.core_type = #tpu.core_type<tc>, window_params = [{pipeline_mode = #tpu.pipeline_mode<synchronous>, transform_indices = @transform_0, window_bounds = array<i64: 40, 512>}, {pipeline_mode = #tpu.pipeline_mode<synchronous>, transform_indices = @transform_1, window_bounds = array<i64: 8, 40>}, {pipeline_mode = #tpu.pipeline_mode<synchronous>, transform_indices = @transform_2, window_bounds = array<i64: 8, 1>}, {pipeline_mode = #tpu.pipeline_mode<synchronous>, transform_indices = @transform_3, window_bounds = array<i64: 8, 512>}]} {
    %c0 = arith.constant 0 : index
    %c0_0 = arith.constant 0 : index
    %0 = vector.load %arg2[%c0, %c0_0] : memref<8x40xbf16, #tpu.memory_space<vmem>>, vector<8x40xbf16>
    %c0_1 = arith.constant 0 : index
    %c0_2 = arith.constant 0 : index
    %1 = vector.load %arg1[%c0_1, %c0_2] : memref<40x512xbf16, #tpu.memory_space<vmem>>, vector<40x512xbf16>
    %cst = arith.constant dense<0.000000e+00> : vector<8x512xf32>
    %2 = tpu.matmul %0, %1, %cst {dimension_numbers = #tpu.dot_dimension_numbers<[1], [0], [0], [1], [0, 0, 1, 1], [], []>} : vector<8x40xbf16>, vector<40x512xbf16>, vector<8x512xf32> -> vector<8x512xf32>
    %c0_3 = arith.constant 0 : index
    %c0_4 = arith.constant 0 : index
    %3 = vector.load %arg3[%c0_3, %c0_4] : memref<8x1xf32, #tpu.memory_space<vmem>>, vector<8x1xf32>
    %4 = vector.broadcast %3 : vector<8x1xf32> to vector<8x512xf32>
    %5 = arith.addf %2, %4 : vector<8x512xf32>
    %cst_5 = arith.constant 0.000000e+00 : f32
    %6 = vector.broadcast %cst_5 : f32 to vector<8x512xf32>
    %7 = arith.maximumf %5, %6 : vector<8x512xf32>
    %c0_6 = arith.constant 0 : index
    %c0_7 = arith.constant 0 : index
    %8 = vector.load %arg4[%c0_6, %c0_7] : memref<8x512xf32, #tpu.memory_space<vmem>>, vector<8x512xf32>
    tpu.vector_store %arg4[%c0_6, %c0_7], %7 {strides = array<i32>} : memref<8x512xf32, #tpu.memory_space<vmem>>, vector<8x512xf32>,
    return
  }
  func.func @transform_0(%arg0: i32) -> (i32, i32) {
    %c0_i32 = arith.constant 0 : i32
    %c0_i32_0 = arith.constant 0 : i32
    %c0_i32_1 = arith.constant 0 : i32
    return %c0_i32, %c0_i32_0 : i32, i32
  }
  func.func @transform_1(%arg0: i32) -> (i32, i32) {
    %c0_i32 = arith.constant 0 : i32
    %c0_i32_0 = arith.constant 0 : i32
    %c0_i32_1 = arith.constant 0 : i32
    return %c0_i32, %c0_i32_0 : i32, i32
  }
  func.func @transform_2(%arg0: i32) -> (i32, i32) {
    %c0_i32 = arith.constant 0 : i32
    %c0_i32_0 = arith.constant 0 : i32
    %c0_i32_1 = arith.constant 0 : i32
    return %c0_i32, %c0_i32_0 : i32, i32
  }
  func.func @transform_3(%arg0: i32) -> (i32, i32) {
    %c0_i32 = arith.constant 0 : i32
    %c0_i32_0 = arith.constant 0 : i32
    %c0_i32_1 = arith.constant 0 : i32
    return %c0_i32, %c0_i32_0 : i32, i32
  }
}

</mosaic_0001>

<bundles_post_ra>
// kernel: tpu_custom_call.1
= control target key start
LH: loop header
LB: loop body
LE: loop exit
PB: predicated region body
PF: predicated region fallthrough
CT: control target
= control target key end

     0   :  { %8 = vsyncpa [#allocation3], 0  ;;  %s360_s0 = inlined_call_operand.hbm [shape: bf16[40,512], index: 0, kind: input, shape index: {}]   ;;  %s361_s1 = inlined_call_operand.vmem [shape: bf16[8,40], index: 1, kind: input, shape index: {}]   ;;  %s362_s2 = inlined_call_operand.vmem [shape: f32[8,1], index: 2, kind: input, shape index: {}]   ;;  %s363_s3 = inlined_call_operand.hbm [shape: f32[8,512], index: 3, kind: output, shape index: {}]  }
   0x1   :  { %9 = vsyncpa [#allocation4], 0  ;;  %s305_s12 = smov [#allocation2]   ;;  %s257_s16 = scalar_lea.hbm %s360_s0, 1280 }
   0x2   :  { %s15_s13 = sshll.u32 %s305_s12, 4  ;;  %p258_p0 = scmp.ne.s32.totalorder %s360_s0, %s257_s16  ;;  %s16_s13 = int_to_ptr.vmem [resolvable:$true] %s15_s13 }
   0x3   :  { %p261_p1 = scmp.lt.u32.totalorder %s257_s16, %s360_s0 }
   0x5   :  { %p263_p2 = pnand %p261_p1, %p258_p0 }
   0x7   :  { %266 = shalt.err (!%p263_p2)
}
   0x8   :  { %s267_s21 = scalar_lea.vmem %s16_s13, 1280  ;;  %p272_p4 = scmp.lt.s32.totalorder %s16_s13, %s16_s13 }
   0x9   :  { %p268_p3 = scmp.ne.s32.totalorder %s16_s13, %s267_s21  ;;  %p273_p5 = scmp.lt.s32.totalorder %s267_s21, %s267_s21 }
   0xb   :  { %p274_p6 = por %p273_p5, %p272_p4 }
   0xd   :  { %p275_p7 = pnand %p274_p6, %p268_p3 }
   0xf   :  { %278 = shalt.err (!%p275_p7)
}
  0x10   :  { %s306_s22 = smov 256   ;;  %s307_s23 = smov 16  }
  0x11   :  { %21 = dma.hbm_to_vmem [thread:$0]  %s360_s0, 1280, %s16_s13, [#allocation3], %s306_s22, %s306_s22, %s307_s23  }
  0x12   :  { %301 = dma.done.wait [#allocation3], 1280  }
  0x13   :  { %302 = vsyncadd [#allocation3], 4294966016  ;;  %v308_v0 = vmov 0   ;;  %v241_v1 = vld [vmem:[#allocation2 + $0x4] ss:$16 sps:$4 sm:$0xff]   ;;  %vm101_vm0 = vcmask 1043456  }
  0x14   :  { %146 = vmatprep.mubr.bf16.mxu0 %v308_v0  ;;  %187 = vmatprep.mubr.bf16.mxu1 %v308_v0  ;;  %v243_v2 = vld [vmem:[#allocation2 + $0xc] ss:$16 sps:$4 sm:$0xff]   ;;  %v245_v3 = vld [vmem:[#allocation2] ss:$16 sps:$4 sm:$0xff]   ;;  %v246_v4 = vld [vmem:[#allocation2 + $0x8] ss:$16 sps:$4 sm:$0xff]  }
  0x15   :  { %240 = vset.pattern.permute.xlu0 %v308_v0  ;;  %114 = vmatprep.subr.bf16.mxu0 %v241_v1  ;;  %v247_v5 = vld [vmem:[#allocation2 + $0x24] ss:$16 sps:$4 sm:$0xff]   ;;  %v249_v6 = vld [vmem:[#allocation2 + $0x2c] ss:$16 sps:$4 sm:$0xff]   ;;  %v251_v7 = vld [vmem:[#allocation2 + $0x20] ss:$16 sps:$4 sm:$0xff]  }
  0x16   :  { %155 = vmatprep.subr.bf16.mxu1 %v243_v2  ;;  %115 = vmatpush1.bf16.msra.mxu0 %v245_v3  ;;  %v252_v8 = vld [vmem:[#allocation2 + $0x28] ss:$16 sps:$4 sm:$0xff]   ;;  %v39_v9 = vld [vmem:[#allocation2 + $0x40] sm:$0xff]  ;;  %vm97_vm1 = vcmask 326656  }
  0x17   :  { %156 = vmatpush1.bf16.msra.mxu1 %v246_v4  ;;  %116 = vmatprep.subr.bf16.mxu0 %v247_v5  ;;  %v40_v10 = vld [vmem:[#allocation2 + $0x48] sm:$0xff]  ;;  %v228_v11 = vcombine.high %v39_v9, %v39_v9  ;;  %v227_v13 = vcombine.low %v39_v9, %v39_v9  ;;  %v41_v15 = vld [vmem:[%s362_s2] sm:$0xff]  ;;  %s309_s2 = smov [#allocation5]  }
  0x18   :  { %157 = vmatprep.subr.bf16.mxu1 %v249_v6  ;;  %v230_v12 = vcombine.high %v40_v10, %v40_v10  ;;  %v229_v14 = vcombine.low %v40_v10, %v40_v10  ;;  %44 = vperm.xlu0 %240, %v41_v15   ;;  %v30_v18 = vld [vmem:[%s361_s1] sm:$0xf]  ;;  %s210_s29 = sshll.u32 %s309_s2, 4  ;;  %s211_s29 = int_to_ptr.vmem [resolvable:$true] %s210_s29 }
  0x19   :  { %v103_v16 = vsel %vm101_vm0, %v227_v13, 0  ;;  %s279_s1 = scalar_lea.vmem %s211_s29, 512  ;;  %p284_p9 = scmp.lt.s32.totalorder %s211_s29, %s211_s29 }
  0x1a   :  { %117 = vmatpush1.bf16.msra.mxu0 %v251_v7  ;;  %v109_v17 = vsel %vm101_vm0, %v229_v14, 0  ;;  %p280_p8 = scmp.ne.s32.totalorder %s211_s29, %s279_s1  ;;  %p285_p10 = scmp.lt.s32.totalorder %s279_s1, %s279_s1 }
  0x1b   :  { %158 = vmatpush1.bf16.msra.mxu1 %v252_v8  ;;  %231 = vmatprep.subr.msk.bf16.mxu0 %vm101_vm0, %v228_v11 }
  0x1c   :  { %233 = vmatprep.subr.msk.bf16.mxu1 %vm101_vm0, %v230_v12  ;;  %p286_p11 = por %p285_p10, %p284_p9 }
  0x1e   :  { %119 = vmatpush1.bf16.msra.mxu0 %v103_v16  ;;  %p287_p12 = pnand %p286_p11, %p280_p8 }
  0x1f   :  { %160 = vmatpush1.bf16.msra.mxu1 %v109_v17 }
  0x21   :  { %232 = vmatmul.mubr.msk.bf16.vlgmr.msra.gmra.mrb[0].mxu0 %vm97_vm1, %v30_v18 }
  0x22   :  { %234 = vmatmul.mubr.msk.bf16.vlgmr.msra.gmra.mrb[0].mxu1 %vm97_vm1, %v30_v18 }
  0x97   :  { %v45_v19 = vpop.permute.xlu0 %44 }
  0xf4   :  { %v148_v20 = vpop.f32.mrb[0].mxu0 }
  0xf5   :  { %v189_v21 = vpop.f32.mrb[0].mxu1  ;;  %v149_v22 = vadd.f32 %v148_v20, %v45_v19  ;;  %v150_v24 = vpop.f32.mrb[1].mxu0 }
  0xf6   :  { %v190_v23 = vadd.f32 %v189_v21, %v45_v19  ;;  %v191_v25 = vpop.f32.mrb[1].mxu1  ;;  %v151_v26 = vadd.f32 %v150_v24, %v45_v19  ;;  %v152_v28 = vpop.f32.mrb[2].mxu0 }
  0xf7   :  { %v192_v27 = vadd.f32 %v191_v25, %v45_v19  ;;  %v193_v29 = vpop.f32.mrb[2].mxu1  ;;  %v196_v30 = vmax.f32 %v149_v22, 0.0  ;;  %v153_v32 = vpop.f32.mrb[3].mxu0 }
  0xf8   :  { %v198_v31 = vmax.f32 %v190_v23, 0.0  ;;  %v194_v33 = vpop.f32.mrb[3].mxu1  ;;  %v197_v34 = vmax.f32 %v151_v26, 0.0 }
  0xf9   :  { %v199_v35 = vmax.f32 %v192_v27, 0.0  ;;  %200 = vst [vmem:[#allocation5] sm:$0xff] %v196_v30 }
  0xfa   :  { %202 = vst [vmem:[#allocation5 + $0x10] sm:$0xff] %v198_v31  ;;  %201 = vst [vmem:[#allocation5 + $0x8] sm:$0xff] %v197_v34 }
  0xfb   :  { %203 = vst [vmem:[#allocation5 + $0x18] sm:$0xff] %v199_v35 }
  0xfc   :  { %290 = shalt.err (!%p287_p12)
}
  0xfd   :  { %s291_s5 = scalar_lea.hbm %s363_s3, 512 }
  0xfe   :  { %p292_p13 = scmp.ne.s32.totalorder %s363_s3, %s291_s5  ;;  %p295_p0 = scmp.lt.u32.totalorder %s291_s5, %s363_s3 }
 0x100   :  { %p297_p1 = pnand %p295_p0, %p292_p13 }
 0x102   :  { %300 = shalt.err (!%p297_p1)
}
 0x103   :  { %213 = dma.vmem_to_hbm [thread:$0]  %s211_s29, 512, %s363_s3, [#allocation4]  }
 0x104   :  { %303 = dma.done.wait [#allocation4], 512  }
 0x105   :  { %304 = vsyncadd [#allocation4], 4294966784 }
 0x106   :  { %217 = vsyncpa [#allocation3], 1 }
 0x107   :  { %218 = vsyncpa [#allocation4], 1 }

</bundles_post_ra>
